<compile_context>
chip_gen: v7x
topology: tpu7x:2x2x1
jax: 0.10.0
libtpu: 0.0.40
codegen_flags: <defaults>
</compile_context>

<pallas_src>
import functools

import jax
import jax.numpy as jnp
from jax.experimental import pallas as pl
from jax.experimental.pallas import tpu as pltpu

_TWO_PI = 6.283185307179586
_LANES = 128
_MAX_BLOCK_ROWS = 512  # 512 x 128 f32 = 256 KiB per operand block


def _gaussian_noise_kernel(x_ref, bits_ref, o_ref, *, std, half_rows):
    """Adds std * N(0,1) noise to x using Box-Muller on pre-drawn bits.

    bits_ref holds one uint32 (bitcast to int32) per output element; each
    (u1,u2) pair produces two normals (cos and sin branches) that fill the
    lower / upper sublane-aligned halves of the block.
    """
    h = half_rows  # static Python int, multiple of 8 -> vreg-aligned split

    # 24 mantissa-sized bits -> uniforms (exact in f32).
    m1 = bits_ref[0:h, :] & 0x00FFFFFF
    m2 = bits_ref[h:2 * h, :] & 0x00FFFFFF
    inv_2_24 = jnp.float32(1.0 / 16777216.0)
    # u1 strictly in (0,1): midpoint of each 2^-24 bucket -> log() always finite,
    # and t > 0 so rsqrt() never sees 0.  No clamp needed.
    u1 = (m1.astype(jnp.float32) + jnp.float32(0.5)) * inv_2_24
    u2 = m2.astype(jnp.float32) * inv_2_24  # [0, 1)

    # Box-Muller, using both outputs.
    t = jnp.float32(-2.0) * jnp.log(u1)
    r = t * jax.lax.rsqrt(t)  # == sqrt(t); rsqrt runs on the EUP slot
    theta = jnp.float32(_TWO_PI) * u2
    z0 = r * jnp.cos(theta)
    z1 = r * jnp.sin(theta)

    s = jnp.float32(std)
    x0 = x_ref[0:h, :].astype(jnp.float32)
    x1 = x_ref[h:2 * h, :].astype(jnp.float32)
    o_ref[0:h, :] = (x0 + s * z0).astype(o_ref.dtype)
    o_ref[h:2 * h, :] = (x1 + s * z1).astype(o_ref.dtype)


def gaussian_noise(x, key, std=0.15):
    """x + N(0, std^2) noise (same shape/dtype), noise math done in Pallas."""
    orig_shape = x.shape
    orig_dtype = x.dtype
    n = x.size

    # Pad flat length to a multiple of 2 * 8 * 128 so the slab is (16k, 128):
    # fully vreg-dense and splittable into two 8-row-aligned halves.
    pair_chunk = 2 * 8 * _LANES  # 2048 elements
    rows = pl.cdiv(n, pair_chunk) * 16
    if rows <= _MAX_BLOCK_ROWS:
        block_rows = rows
    else:
        block_rows = _MAX_BLOCK_ROWS
        rows = pl.cdiv(rows, block_rows) * block_rows
    padded = rows * _LANES

    xf = jnp.ravel(x)
    if padded != n:
        xf = jnp.pad(xf, (0, padded - n))
    x2d = xf.reshape(rows, _LANES)

    # One uint32 of entropy per output element (unique per block by
    # construction, so no per-block seeding issue).
    bits = jax.random.bits(key, (rows, _LANES), dtype=jnp.uint32)
    bits = jax.lax.bitcast_convert_type(bits, jnp.int32)

    grid = (rows // block_rows,)
    kernel = functools.partial(
        _gaussian_noise_kernel, std=float(std), half_rows=block_rows // 2
    )

    cost = pl.CostEstimate(
        flops=12 * padded,
        transcendentals=2 * padded,  # (log + rsqrt + cos + sin) per 2 elems
        bytes_accessed=3 * padded * 4,
    )

    out2d = pl.pallas_call(
        kernel,
        out_shape=jax.ShapeDtypeStruct((rows, _LANES), orig_dtype),
        grid=grid,
        in_specs=[
            pl.BlockSpec((block_rows, _LANES), lambda i: (i, 0)),  # x slab
            pl.BlockSpec((block_rows, _LANES), lambda i: (i, 0)),  # bits
        ],
        out_specs=pl.BlockSpec((block_rows, _LANES), lambda i: (i, 0)),
        compiler_params=pltpu.CompilerParams(
            dimension_semantics=("parallel",)
        ),
        cost_estimate=cost,
    )(x2d, bits)

    return out2d.reshape(-1)[:n].reshape(orig_shape)


if __name__ == "__main__":
    # Small shapes consistent with GaussianNoise(batch_size=2, input_shape=(C,H,W)).
    key = jax.random.PRNGKey(0)
    kx, kn = jax.random.split(key)
    x = jax.random.normal(kx, (2, 4, 16, 16), dtype=jnp.float32)

    y = gaussian_noise(x, kn, std=0.15)
    y = jax.block_until_ready(y)

    # Sanity checks: shape/dtype preserved, noise ~ N(0, 0.15^2).
    assert y.shape == x.shape and y.dtype == x.dtype
    noise = y - x
    noise_mean = float(jnp.mean(noise))
    noise_std = float(jnp.std(noise))
    assert abs(noise_mean) < 0.03, noise_mean
    assert abs(noise_std - 0.15) < 0.03, noise_std

    print("KERNEL_OK")
</pallas_src>

<mosaic_0001>
module attributes {stable_mosaic.version = 11 : i64} {
  func.func @_gaussian_noise_kernel(%arg0: i32, %arg1: memref<16x128xf32, #tpu.memory_space<vmem>>, %arg2: memref<16x128xi32, #tpu.memory_space<vmem>>, %arg3: memref<16x128xf32, #tpu.memory_space<vmem>>) attributes {dimension_semantics = [#tpu.dimension_semantics<parallel>], iteration_bounds = array<i64: 1>, scalar_prefetch = 0 : i64, scratch_operands = 0 : i64, tpu.core_type = #tpu.core_type<tc>, window_params = [{transform_indices = @transform_0, window_bounds = array<i64: 16, 128>}, {transform_indices = @transform_1, window_bounds = array<i64: 16, 128>}, {transform_indices = @transform_2, window_bounds = array<i64: 16, 128>}]} {
    %c0 = arith.constant 0 : index
    %c0_0 = arith.constant 0 : index
    %0 = vector.load %arg2[%c0, %c0_0] : memref<16x128xi32, #tpu.memory_space<vmem>>, vector<8x128xi32>
    %c16777215_i32 = arith.constant 16777215 : i32
    %1 = vector.broadcast %c16777215_i32 : i32 to vector<8x128xi32>
    %2 = arith.andi %0, %1 : vector<8x128xi32>
    %c8 = arith.constant 8 : index
    %c0_1 = arith.constant 0 : index
    %3 = vector.load %arg2[%c8, %c0_1] : memref<16x128xi32, #tpu.memory_space<vmem>>, vector<8x128xi32>
    %c16777215_i32_2 = arith.constant 16777215 : i32
    %4 = vector.broadcast %c16777215_i32_2 : i32 to vector<8x128xi32>
    %5 = arith.andi %3, %4 : vector<8x128xi32>
    %6 = arith.sitofp %2 : vector<8x128xi32> to vector<8x128xf32>
    %cst = arith.constant 5.000000e-01 : f32
    %7 = vector.broadcast %cst : f32 to vector<8x128xf32>
    %8 = arith.addf %6, %7 : vector<8x128xf32>
    %cst_3 = arith.constant 5.96046448E-8 : f32
    %9 = vector.broadcast %cst_3 : f32 to vector<8x128xf32>
    %10 = arith.mulf %8, %9 : vector<8x128xf32>
    %11 = arith.sitofp %5 : vector<8x128xi32> to vector<8x128xf32>
    %cst_4 = arith.constant 5.96046448E-8 : f32
    %12 = vector.broadcast %cst_4 : f32 to vector<8x128xf32>
    %13 = arith.mulf %11, %12 : vector<8x128xf32>
    %14 = math.log %10 : vector<8x128xf32>
    %cst_5 = arith.constant -2.000000e+00 : f32
    %15 = vector.broadcast %cst_5 : f32 to vector<8x128xf32>
    %16 = arith.mulf %15, %14 : vector<8x128xf32>
    %17 = math.rsqrt %16 : vector<8x128xf32>
    %18 = arith.mulf %16, %17 : vector<8x128xf32>
    %cst_6 = arith.constant 6.28318548 : f32
    %19 = vector.broadcast %cst_6 : f32 to vector<8x128xf32>
    %20 = arith.mulf %19, %13 : vector<8x128xf32>
    %21 = math.cos %20 : vector<8x128xf32>
    %22 = arith.mulf %18, %21 : vector<8x128xf32>
    %23 = math.sin %20 : vector<8x128xf32>
    %24 = arith.mulf %18, %23 : vector<8x128xf32>
    %c0_7 = arith.constant 0 : index
    %c0_8 = arith.constant 0 : index
    %25 = vector.load %arg1[%c0_7, %c0_8] : memref<16x128xf32, #tpu.memory_space<vmem>>, vector<8x128xf32>
    %c8_9 = arith.constant 8 : index
    %c0_10 = arith.constant 0 : index
    %26 = vector.load %arg1[%c8_9, %c0_10] : memref<16x128xf32, #tpu.memory_space<vmem>>, vector<8x128xf32>
    %cst_11 = arith.constant 1.500000e-01 : f32
    %27 = vector.broadcast %cst_11 : f32 to vector<8x128xf32>
    %28 = arith.mulf %27, %22 : vector<8x128xf32>
    %29 = arith.addf %25, %28 : vector<8x128xf32>
    %c0_12 = arith.constant 0 : index
    %c0_13 = arith.constant 0 : index
    %30 = vector.load %arg3[%c0_12, %c0_13] : memref<16x128xf32, #tpu.memory_space<vmem>>, vector<8x128xf32>
    tpu.vector_store %arg3[%c0_12, %c0_13], %29 {strides = array<i32>} : memref<16x128xf32, #tpu.memory_space<vmem>>, vector<8x128xf32>,
    %cst_14 = arith.constant 1.500000e-01 : f32
    %31 = vector.broadcast %cst_14 : f32 to vector<8x128xf32>
    %32 = arith.mulf %31, %24 : vector<8x128xf32>
    %33 = arith.addf %26, %32 : vector<8x128xf32>
    %c8_15 = arith.constant 8 : index
    %c0_16 = arith.constant 0 : index
    %34 = vector.load %arg3[%c8_15, %c0_16] : memref<16x128xf32, #tpu.memory_space<vmem>>, vector<8x128xf32>
    tpu.vector_store %arg3[%c8_15, %c0_16], %33 {strides = array<i32>} : memref<16x128xf32, #tpu.memory_space<vmem>>, vector<8x128xf32>,
    return
  }
  func.func @transform_0(%arg0: i32) -> (i32, i32) {
    %c0_i32 = arith.constant 0 : i32
    %c0_i32_0 = arith.constant 0 : i32
    return %arg0, %c0_i32 : i32, i32
  }
  func.func @transform_1(%arg0: i32) -> (i32, i32) {
    %c0_i32 = arith.constant 0 : i32
    %c0_i32_0 = arith.constant 0 : i32
    return %arg0, %c0_i32 : i32, i32
  }
  func.func @transform_2(%arg0: i32) -> (i32, i32) {
    %c0_i32 = arith.constant 0 : i32
    %c0_i32_0 = arith.constant 0 : i32
    return %arg0, %c0_i32 : i32, i32
  }
}

</mosaic_0001>

<bundles_post_ra>
// kernel: tpu_custom_call.1
= control target key start
LH: loop header
LB: loop body
LE: loop exit
PB: predicated region body
PF: predicated region fallthrough
CT: control target
= control target key end

     0   :  { %7 = vsyncpa [#allocation3], 0  ;;  %s488_s0 = inlined_call_operand.hbm [shape: f32[16,128], index: 0, kind: input, shape index: {}]   ;;  %s489_s1 = inlined_call_operand.hbm [shape: s32[16,128], index: 1, kind: input, shape index: {}]   ;;  %s490_s2 = inlined_call_operand.hbm [shape: f32[16,128], index: 2, kind: output, shape index: {}]  }
   0x1   :  { %8 = vsyncpa [#allocation6], 0 }
   0x2   :  { %9 = vsyncpa [#allocation4], 0  ;;  %s393_s9 = smov [#allocation2]   ;;  %s321_s13 = scalar_lea.hbm %s488_s0, 256 }
   0x3   :  { %s15_s10 = sshll.u32 %s393_s9, 4  ;;  %p322_p0 = scmp.ne.s32.totalorder %s488_s0, %s321_s13  ;;  %s16_s10 = int_to_ptr.vmem [resolvable:$true] %s15_s10 }
   0x4   :  { %p325_p1 = scmp.lt.u32.totalorder %s321_s13, %s488_s0 }
   0x6   :  { %p327_p2 = pnand %p325_p1, %p322_p0 }
   0x8   :  { %330 = shalt.err (!%p327_p2)
}
   0x9   :  { %s331_s18 = scalar_lea.vmem %s16_s10, 256  ;;  %p336_p4 = scmp.lt.s32.totalorder %s16_s10, %s16_s10 }
   0xa   :  { %p332_p3 = scmp.ne.s32.totalorder %s16_s10, %s331_s18  ;;  %p337_p5 = scmp.lt.s32.totalorder %s331_s18, %s331_s18 }
   0xc   :  { %p338_p6 = por %p337_p5, %p336_p4 }
   0xe   :  { %p339_p7 = pnand %p338_p6, %p332_p3 }
  0x10   :  { %342 = shalt.err (!%p339_p7)
}
  0x11   :  { %s394_s19 = smov 128   ;;  %s395_s20 = smov 8  }
  0x12   :  { %21 = dma.hbm_to_vmem [thread:$0]  %s488_s0, 256, %s16_s10, [#allocation3], %s394_s19, %s394_s19, %s395_s20  }
  0x13   :  { %s396_s23 = smov [#allocation5]   ;;  %s343_s27 = scalar_lea.hbm %s489_s1, 256 }
  0x14   :  { %s27_s24 = sshll.u32 %s396_s23, 4  ;;  %p344_p8 = scmp.ne.s32.totalorder %s489_s1, %s343_s27  ;;  %s28_s24 = int_to_ptr.vmem [resolvable:$true] %s27_s24 }
  0x15   :  { %p347_p9 = scmp.lt.u32.totalorder %s343_s27, %s489_s1 }
  0x17   :  { %p349_p10 = pnand %p347_p9, %p344_p8 }
  0x19   :  { %352 = shalt.err (!%p349_p10)
}
  0x1a   :  { %s353_s4 = scalar_lea.vmem %s28_s24, 256  ;;  %p358_p12 = scmp.lt.s32.totalorder %s28_s24, %s28_s24 }
  0x1b   :  { %p354_p11 = scmp.ne.s32.totalorder %s28_s24, %s353_s4  ;;  %p359_p13 = scmp.lt.s32.totalorder %s353_s4, %s353_s4 }
  0x1d   :  { %p360_p0 = por %p359_p13, %p358_p12 }
  0x1f   :  { %p361_p1 = pnand %p360_p0, %p354_p11 }
  0x21   :  { %364 = shalt.err (!%p361_p1)
}
  0x22   :  { %33 = dma.hbm_to_vmem [thread:$0]  %s489_s1, 256, %s28_s24, [#allocation6], %s394_s19, %s394_s19, %s395_s20  }
  0x23   :  { %387 = dma.done.wait [#allocation3], 256  }
  0x24   :  { %388 = vsyncadd [#allocation3], 4294967040 }
  0x25   :  { %389 = dma.done.wait [#allocation6], 256  }
  0x26   :  { %390 = vsyncadd [#allocation6], 4294967040  ;;  %v42_v0 = vld [vmem:[#allocation5 + $0x8] sm:$0xff]  ;;  %v397_v16 = vmov 683565275   ;;  %v40_v55 = vld [vmem:[#allocation5] sm:$0xff] }
  0x27   :  { %v43_v1 = vand.u32 16777215, %v42_v0  ;;  %v398_v18 = vmov 2475754826   ;;  %v399_v20 = vmov 2131351028  }
  0x28   :  { %v400_v22 = vmov 2102212464   ;;  %v401_v24 = vmov 920167782   ;;  %v402_v31 = vmov 1326507024  }
  0x29   :  { %v47_v2 = vcvt.s32.f32 %v43_v1  ;;  %v41_v58 = vand.u32 16777215, %v40_v55  ;;  %s403_s1 = smov [#allocation7]  }
  0x2a   :  { %s277_s6 = sshll.u32 %s403_s1, 4  ;;  %s278_s6 = int_to_ptr.vmem [resolvable:$true] %s277_s6 }
  0x2b   :  { %v48_v3 = vmul.f32 5.9604645e-08, %v47_v2  ;;  %v44_v61 = vcvt.s32.f32 %v41_v58  ;;  %s365_s7 = scalar_lea.vmem %s278_s6, 256  ;;  %p370_p3 = scmp.lt.s32.totalorder %s278_s6, %s278_s6 }
  0x2c   :  { %p366_p2 = scmp.ne.s32.totalorder %s278_s6, %s365_s7  ;;  %p371_p4 = scmp.lt.s32.totalorder %s365_s7, %s365_s7 }
  0x2d   :  { %v449_v4 = vmul.f32 6.2831855, %v48_v3  ;;  %v45_v0 = vadd.f32 0.5, %v44_v61 }
  0x2e   :  { %p372_p5 = por %p371_p4, %p370_p3 }
  0x2f   :  { %v58_v5 = vand.u32 2139095040, %v449_v4  ;;  %v55_v7 = vand.u32 2147483647, %v449_v4  ;;  %v46_v3 = vmul.f32 5.9604645e-08, %v45_v0  ;;  %vm57_vm7 = vcmp.lt.s32.totalorder %v449_v4, 0 }
  0x30   :  { %vm147_vm15 = vweird.f32 %v449_v4  ;;  %p373_p6 = pnand %p372_p5, %p366_p2 }
  0x31   :  { %v59_v6 = vshrl.u32 %v58_v5, 23  ;;  %v62_v10 = vand.u32 8388607, %v55_v7  ;;  %313 = vlog2.f32 %v46_v3  ;;  %vm56_vm8 = vcmp.le.f32.partialorder %v55_v7, 0.7853982 }
  0x33   :  { %v290_v8 = vadd.s32 4294967169, %v59_v6  ;;  %v63_v13 = vor.u32 8388608, %v62_v10 }
  0x35   :  { %v65_v9 = vadd.s32 1, %v290_v8  ;;  %v103_v33 = vshll.u32 %v63_v13, 8 }
  0x37   :  { %vm66_vm0 = vcmp.gt.s32.totalorder %v65_v9, 0 }
  0x38   :  { %v67_v11 = vsel %vm66_vm0, %v65_v9, 0 }
  0x39   :  { %v69_v12 = vand.u32 31, %v67_v11  ;;  %v68_v14 = vshrl.u32 %v67_v11, 5 }
  0x3b   :  { %v70_v15 = vsub.s32 32, %v69_v12  ;;  %v72_v17 = vshll.u32 %v397_v16, %v69_v12  ;;  %v75_v19 = vshll.u32 %v398_v18, %v69_v12  ;;  %v78_v21 = vshll.u32 %v399_v20, %v69_v12 }
  0x3c   :  { %v81_v23 = vshll.u32 %v400_v22, %v69_v12  ;;  %v84_v25 = vshll.u32 %v401_v24, %v69_v12  ;;  %vm87_vm1 = vcmp.lt.s32.totalorder %v68_v14, 1  ;;  %vm88_vm2 = vcmp.lt.s32.totalorder %v68_v14, 2 }
  0x3d   :  { %v71_v26 = vshrl.u32 %v397_v16, %v70_v15  ;;  %v73_v27 = vshrl.u32 %v398_v18, %v70_v15  ;;  %v76_v28 = vshrl.u32 %v399_v20, %v70_v15  ;;  %v79_v29 = vshrl.u32 %v400_v22, %v70_v15 }
  0x3e   :  { %v82_v30 = vshrl.u32 %v401_v24, %v70_v15  ;;  %v85_v32 = vshrl.u32 %v402_v31, %v70_v15  ;;  %vm89_vm3 = vcmp.lt.s32.totalorder %v68_v14, 3  ;;  %vm90_vm4 = vcmp.lt.s32.totalorder %v68_v14, 4 }
  0x3f   :  { %v74_v34 = vor.u32 %v73_v27, %v72_v17  ;;  %v77_v35 = vor.u32 %v76_v28, %v75_v19  ;;  %v80_v36 = vor.u32 %v79_v29, %v78_v21  ;;  %v314_v17 = vpop.eup %313 }
  0x40   :  { %v83_v37 = vor.u32 %v82_v30, %v81_v23  ;;  %v86_v38 = vor.u32 %v85_v32, %v84_v25  ;;  %v50_v22 = vmul.f32 0.6931472, %v314_v17 }
  0x41   :  { %v91_v39 = vsel %vm87_vm1, %v71_v26, %v74_v34  ;;  %v92_v40 = vsel %vm90_vm4, %v80_v36, 2102212464  ;;  %v95_v41 = vsel %vm87_vm1, %v74_v34, %v77_v35  ;;  %v99_v42 = vsel %vm87_vm1, %v77_v35, %v80_v36 }
  0x42   :  { %v93_v43 = vsel %vm89_vm3, %v77_v35, %v92_v40  ;;  %v96_v44 = vsel %vm90_vm4, %v83_v37, 920167782  ;;  %v100_v45 = vsel %vm90_vm4, %v86_v38, 1326507024  ;;  %v51_v26 = vmul.f32 -2.0, %v50_v22 }
  0x43   :  { %v97_v46 = vsel %vm89_vm3, %v80_v36, %v96_v44  ;;  %v101_v47 = vsel %vm89_vm3, %v83_v37, %v100_v45  ;;  %v94_v48 = vsel %vm88_vm2, %v91_v39, %v93_v43 }
  0x44   :  { %v98_v49 = vsel %vm88_vm2, %v95_v41, %v97_v46  ;;  %v102_v50 = vsel %vm88_vm2, %v99_v42, %v101_v47  ;;  %v110_v56 = vmul.u32 %v103_v33, %v94_v48  ;;  %315 = vrsqrt.f32 %v51_v26 }
  0x45   :  { %v458_v51 = vmul.u32.u64.low %v103_v33, %v102_v50  ;;  %v459_v52 = vmul.u32.u64.high %v103_v33, %v102_v50, %v458_v51  ;;  %v461_v53 = vmul.u32.u64.low %v103_v33, %v98_v49  ;;  %v462_v54 = vmul.u32.u64.high %v103_v33, %v98_v49, %v461_v53  ;;  %v264_v50 = vld [vmem:[#allocation2] sm:$0xff] }
  0x46   :  { %v265_v51 = vld [vmem:[#allocation2 + $0x8] sm:$0xff] }
  0x47   :  { %vm112_vm5 = vc.u32 %v459_v52, %v461_v53  ;;  %v113_v57 = vadd.s32 1, %v462_v54  ;;  %v111_v10 = vadd.s32 %v461_v53, %v459_v52 }
  0x49   :  { %v114_v59 = vsel %vm112_vm5, %v113_v57, %v462_v54 }
  0x4a   :  { %v115_v60 = vadd.s32 %v114_v59, %v110_v56 }
  0x4c   :  { %v116_v62 = vadd.s32 536870912, %v115_v60 }
  0x4e   :  { %v117_v63 = vshrl.u32 %v116_v62, 30  ;;  %v316_v35 = vpop.eup %315 }
  0x4f   :  { %v53_v39 = vmul.f32 %v316_v35, %v51_v26 }
  0x50   :  { %v118_v1 = vshll.u32 %v117_v63, 30  ;;  %v141_v24 = vsub.s32 4, %v117_v63 }
  0x52   :  { %v119_v2 = vsub.s32 %v115_v60, %v118_v1  ;;  %v142_v28 = vsel %vm57_vm7, %v141_v24, %v117_v63 }
  0x53   :  { %v144_v31 = vsel %vm56_vm8, 0, %v142_v28 }
  0x54   :  { %v121_v5 = vsub.s32 0, %v119_v2  ;;  %v252_v32 = vadd.s32 3, %v144_v31  ;;  %v148_v33 = vand.u32 3, %v144_v31 }
  0x56   :  { %v291_v6 = vmin.u32 %v121_v5, %v119_v2  ;;  %v253_v34 = vand.u32 3, %v252_v32  ;;  %vm153_vm9 = vcmp.eq.s32.totalorder %v148_v33, 2  ;;  %vm150_vm11 = vcmp.eq.s32.totalorder %v148_v33, 0 }
  0x57   :  { %vm149_vm13 = vcmp.lt.s32.totalorder %v148_v33, 2 }
  0x58   :  { %v123_v8 = vclz %v291_v6  ;;  %vm258_vm10 = vcmp.eq.s32.totalorder %v253_v34, 2  ;;  %vm255_vm12 = vcmp.eq.s32.totalorder %v253_v34, 0  ;;  %vm254_vm14 = vcmp.lt.s32.totalorder %v253_v34, 2 }
  0x5a   :  { %v292_v9 = vadd.s32 4294967294, %v123_v8 }
  0x5c   :  { %vm293_vm6 = vcmp.lt.s32.totalorder %v292_v9, 0 }
  0x5d   :  { %v126_v11 = vsel %vm293_vm6, 0, %v292_v9 }
  0x5e   :  { %v127_v12 = vsub.s32 32, %v126_v11  ;;  %v128_v13 = vshll.u32 %v119_v2, %v126_v11  ;;  %v131_v14 = vsub.s32 4294967266, %v126_v11 }
  0x60   :  { %v129_v15 = vshrl.u32 %v111_v10, %v127_v12  ;;  %v132_v16 = vadd.s32 127, %v131_v14 }
  0x62   :  { %v130_v18 = vor.u32 %v129_v15, %v128_v13  ;;  %v133_v19 = vshll.u32 %v132_v16, 23 }
  0x64   :  { %v134_v20 = vor.u32 4788187, %v133_v19  ;;  %v137_v21 = vcvt.s32.f32 %v130_v18 }
  0x66   :  { %v135_v23 = vand.u32 2147483647, %v134_v20 }
  0x68   :  { %v138_v25 = vmul.f32 %v137_v21, %v135_v23 }
  0x6a   :  { %v139_v27 = vxor.u32 2147483648, %v138_v25 }
  0x6c   :  { %v140_v29 = vsel %vm57_vm7, %v139_v27, %v138_v25 }
  0x6d   :  { %v143_v30 = vsel %vm56_vm8, %v449_v4, %v140_v29 }
  0x6e   :  { %317 = vcosq.f32 %v143_v30 }
  0x6f   :  { %319 = vsinq.f32 %v143_v30 }
  0x78   :  { %v318_v36 = vpop.eup %317 }
  0x79   :  { %v320_v37 = vpop.eup %319  ;;  %v154_v38 = vxor.u32 2147483648, %v318_v36 }
  0x7a   :  { %v151_v7 = vxor.u32 2147483648, %v320_v37 }
  0x7b   :  { %v155_v40 = vsel %vm153_vm9, %v154_v38, %v320_v37  ;;  %v260_v41 = vsel %vm258_vm10, %v154_v38, %v320_v37 }
  0x7c   :  { %v152_v42 = vsel %vm150_vm11, %v318_v36, %v151_v7  ;;  %v257_v43 = vsel %vm255_vm12, %v318_v36, %v151_v7 }
  0x7d   :  { %v156_v44 = vsel %vm149_vm13, %v152_v42, %v155_v40  ;;  %v261_v45 = vsel %vm254_vm14, %v257_v43, %v260_v41 }
  0x7e   :  { %v157_v46 = vsel %vm147_vm15, nan, %v156_v44  ;;  %v262_v47 = vsel %vm147_vm15, nan, %v261_v45 }
  0x7f   :  { %v158_v48 = vmul.f32 %v157_v46, %v53_v39  ;;  %v263_v49 = vmul.f32 %v262_v47, %v53_v39 }
  0x81   :  { %v266_v52 = vmul.f32 0.15, %v158_v48  ;;  %v269_v53 = vmul.f32 0.15, %v263_v49 }
  0x83   :  { %v267_v54 = vadd.f32 %v266_v52, %v264_v50  ;;  %v270_v55 = vadd.f32 %v269_v53, %v265_v51 }
  0x85   :  { %268 = vst [vmem:[#allocation7] sm:$0xff] %v267_v54  ;;  %271 = vst [vmem:[#allocation7 + $0x8] sm:$0xff] %v270_v55 }
  0x86   :  { %376 = shalt.err (!%p373_p6)
}
  0x87   :  { %s377_s10 = scalar_lea.hbm %s490_s2, 256 }
  0x88   :  { %p378_p7 = scmp.ne.s32.totalorder %s490_s2, %s377_s10  ;;  %p381_p8 = scmp.lt.u32.totalorder %s377_s10, %s490_s2 }
  0x8a   :  { %p383_p9 = pnand %p381_p8, %p378_p7 }
  0x8c   :  { %386 = shalt.err (!%p383_p9)
}
  0x8d   :  { %283 = dma.vmem_to_hbm [thread:$0]  %s278_s6, 256, %s490_s2, [#allocation4], %s394_s19, %s394_s19, %s395_s20  }
  0x8e   :  { %391 = dma.done.wait [#allocation4], 256  }
  0x8f   :  { %392 = vsyncadd [#allocation4], 4294967040 }
  0x90   :  { %287 = vsyncpa [#allocation3], 1 }
  0x91   :  { %288 = vsyncpa [#allocation6], 1 }
  0x92   :  { %289 = vsyncpa [#allocation4], 1 }

</bundles_post_ra>
